<compile_context>
chip_gen: v7x
topology: tpu7x:2x2x1
jax: 0.10.0
libtpu: 0.0.40
codegen_flags: <defaults>
</compile_context>

<pallas_src>
import jax
import jax.numpy as jnp
from jax.experimental import pallas as pl
from jax.experimental.pallas import tpu as pltpu

HIDDEN = 128
OUT = 64


def _round_up(x, m):
    return ((x + m - 1) // m) * m


def mlp1_kernel(x_ref, w1_ref, b1_ref, w2_ref, b2_ref, o_ref, acc_ref):
    """One (TILE_B, TILE_K) step of  y = relu(x @ W1 + b1) @ W2 + b2."""
    k = pl.program_id(1)

    @pl.when(k == 0)
    def _():
        acc_ref[...] = jnp.zeros_like(acc_ref)

    # Partial first matmul on the MXU, f32 accumulation in VMEM scratch.
    acc_ref[...] += jnp.dot(x_ref[...], w1_ref[...],
                            preferred_element_type=jnp.float32)

    @pl.when(k == pl.num_programs(1) - 1)
    def _():
        # Bias + ReLU on the VPU in f32, then the second (small) matmul.
        h = jnp.maximum(acc_ref[...] + b1_ref[...], 0.0)
        y = jnp.dot(h.astype(w2_ref.dtype), w2_ref[...],
                    preferred_element_type=jnp.float32)
        y = y + b2_ref[...]
        o_ref[...] = y.astype(o_ref.dtype)


def mlp1_forward(x, w1, b1, w2, b2, *, tile_b=512, tile_k=512, use_bf16=False):
    B, D = x.shape
    assert w1.shape == (D, HIDDEN) and w2.shape == (HIDDEN, OUT)
    b1 = b1.reshape(1, HIDDEN).astype(jnp.float32)
    b2 = b2.reshape(1, OUT).astype(jnp.float32)

    if use_bf16:
        # Opt-in: bf16 MXU operands, f32 accumulation (looser tolerance).
        x = x.astype(jnp.bfloat16)
        w1 = w1.astype(jnp.bfloat16)
        w2 = w2.astype(jnp.bfloat16)

    # --- tile selection (cap by problem size; keep sublane multiples of 8) ----
    tile_b = min(tile_b, _round_up(B, 8))
    tile_k = min(tile_k, D)

    # --- pad batch / contraction dims to tile multiples (zeros are harmless) --
    B_pad = _round_up(B, tile_b)
    D_pad = _round_up(D, tile_k)
    if (B_pad, D_pad) != (B, D):
        x = jnp.pad(x, ((0, B_pad - B), (0, D_pad - D)))
    if D_pad != D:
        w1 = jnp.pad(w1, ((0, D_pad - D), (0, 0)))

    n_b = B_pad // tile_b
    n_k = D_pad // tile_k

    cost = pl.CostEstimate(
        flops=2 * B_pad * (D_pad * HIDDEN + HIDDEN * OUT),
        transcendentals=0,
        bytes_accessed=(x.dtype.itemsize * B_pad * D_pad
                        + w1.dtype.itemsize * D_pad * HIDDEN
                        + w2.dtype.itemsize * HIDDEN * OUT
                        + 4 * (HIDDEN + OUT)
                        + 4 * B_pad * OUT),
    )

    out = pl.pallas_call(
        mlp1_kernel,
        out_shape=jax.ShapeDtypeStruct((B_pad, OUT), jnp.float32),
        grid_spec=pltpu.PrefetchScalarGridSpec(
            num_scalar_prefetch=0,
            grid=(n_b, n_k),
            in_specs=[
                pl.BlockSpec((tile_b, tile_k), lambda i, k: (i, k)),   # x: streamed tiles
                pl.BlockSpec((tile_k, HIDDEN), lambda i, k: (k, 0)),   # W1: K-slab
                pl.BlockSpec((1, HIDDEN), lambda i, k: (0, 0)),        # b1: resident
                pl.BlockSpec((HIDDEN, OUT), lambda i, k: (0, 0)),      # W2: resident
                pl.BlockSpec((1, OUT), lambda i, k: (0, 0)),           # b2: resident
            ],
            out_specs=pl.BlockSpec((tile_b, OUT), lambda i, k: (i, 0)),
            scratch_shapes=[pltpu.VMEM((tile_b, HIDDEN), jnp.float32)],
        ),
        compiler_params=pltpu.CompilerParams(
            # Batch tiles are independent (shardable across v7x's 2 TCs);
            # K is a reduction axis, so it stays "arbitrary" and last.
            dimension_semantics=("parallel", "arbitrary")),
        cost_estimate=cost,
    )(x, w1, b1, w2, b2)

    return out[:B]


def init_params(key, input_dim):
    # Mimics nn.Linear's uniform(-1/sqrt(fan_in), 1/sqrt(fan_in)) init.
    k1, k2, k3, k4 = jax.random.split(key, 4)
    bound1 = 1.0 / jnp.sqrt(input_dim)
    bound2 = 1.0 / jnp.sqrt(HIDDEN)
    w1 = jax.random.uniform(k1, (input_dim, HIDDEN), jnp.float32, -bound1, bound1)
    b1 = jax.random.uniform(k2, (1, HIDDEN), jnp.float32, -bound1, bound1)
    w2 = jax.random.uniform(k3, (HIDDEN, OUT), jnp.float32, -bound2, bound2)
    b2 = jax.random.uniform(k4, (1, OUT), jnp.float32, -bound2, bound2)
    return w1, b1, w2, b2


def reference(x, w1, b1, w2, b2):
    return jnp.maximum(x @ w1 + b1, 0.0) @ w2 + b2


if __name__ == "__main__":
    key = jax.random.PRNGKey(0)
    kx1, kp1, kx2, kp2 = jax.random.split(key, 4)

    # 1) Small shape (B not a multiple of 8 -> exercises batch padding), f32 path.
    batch, input_dim = 10, 32
    x = jax.random.normal(kx1, (batch, input_dim), jnp.float32)
    w1, b1, w2, b2 = init_params(kp1, input_dim)
    out = mlp1_forward(x, w1, b1, w2, b2)
    jax.block_until_ready(out)
    ref = reference(x, w1, b1, w2, b2)
    assert out.shape == (batch, OUT)
    assert jnp.allclose(out, ref, atol=1e-5, rtol=1e-5)

    # 2) Multi-tile path: several batch tiles + K accumulation + D padding, f32.
    batch2, input_dim2 = 600, 160
    x2 = jax.random.normal(kx2, (batch2, input_dim2), jnp.float32)
    p2 = init_params(kp2, input_dim2)
    out2 = mlp1_forward(x2, *p2, tile_b=256, tile_k=128)
    jax.block_until_ready(out2)
    ref2 = reference(x2, *p2)
    assert out2.shape == (batch2, OUT)
    assert jnp.allclose(out2, ref2, atol=1e-4, rtol=1e-4)

    # 3) Opt-in bf16 MXU operands (f32 accumulate) with relaxed tolerance.
    out_bf16 = mlp1_forward(x, w1, b1, w2, b2, use_bf16=True)
    jax.block_until_ready(out_bf16)
    assert jnp.allclose(out_bf16, ref, atol=3e-2, rtol=3e-2)

    print("KERNEL_OK")
</pallas_src>

<mosaic_0001>
module attributes {stable_mosaic.version = 11 : i64} {
  func.func @mlp1_kernel(%arg0: i32, %arg1: i32, %arg2: memref<16x32xf32, #tpu.memory_space<vmem>>, %arg3: memref<32x128xf32, #tpu.memory_space<vmem>>, %arg4: memref<1x128xf32, #tpu.memory_space<vmem>>, %arg5: memref<128x64xf32, #tpu.memory_space<vmem>>, %arg6: memref<1x64xf32, #tpu.memory_space<vmem>>, %arg7: memref<16x64xf32, #tpu.memory_space<vmem>>, %arg8: memref<16x128xf32, #tpu.memory_space<vmem>>) attributes {dimension_semantics = [#tpu.dimension_semantics<parallel>, #tpu.dimension_semantics<arbitrary>], iteration_bounds = array<i64: 1, 1>, scalar_prefetch = 0 : i64, scratch_operands = 1 : i64, tpu.core_type = #tpu.core_type<tc>, window_params = [{transform_indices = @transform_0, window_bounds = array<i64: 16, 32>}, {transform_indices = @transform_1, window_bounds = array<i64: 32, 128>}, {pipeline_mode = #tpu.pipeline_mode<synchronous>, transform_indices = @transform_2, window_bounds = array<i64: 1, 128>}, {pipeline_mode = #tpu.pipeline_mode<synchronous>, transform_indices = @transform_3, window_bounds = array<i64: 128, 64>}, {pipeline_mode = #tpu.pipeline_mode<synchronous>, transform_indices = @transform_4, window_bounds = array<i64: 1, 64>}, {transform_indices = @transform_5, window_bounds = array<i64: 16, 64>}]} {
    %c0_i32 = arith.constant 0 : i32
    %0 = arith.cmpi eq, %arg1, %c0_i32 : i32
    %1 = arith.extui %0 : i1 to i32
    %c0_i32_0 = arith.constant 0 : i32
    %2 = arith.cmpi ne, %1, %c0_i32_0 : i32
    scf.if %2 {
      %cst_10 = arith.constant 0.000000e+00 : f32
      %12 = vector.broadcast %cst_10 : f32 to vector<16x128xf32>
      %c0_11 = arith.constant 0 : index
      %c0_12 = arith.constant 0 : index
      %13 = vector.load %arg8[%c0_11, %c0_12] : memref<16x128xf32, #tpu.memory_space<vmem>>, vector<16x128xf32>
      tpu.vector_store %arg8[%c0_11, %c0_12], %12 {strides = array<i32>} : memref<16x128xf32, #tpu.memory_space<vmem>>, vector<16x128xf32>,
    } else {
    }
    %c0 = arith.constant 0 : index
    %c0_1 = arith.constant 0 : index
    %3 = vector.load %arg8[%c0, %c0_1] : memref<16x128xf32, #tpu.memory_space<vmem>>, vector<16x128xf32>
    %c0_2 = arith.constant 0 : index
    %c0_3 = arith.constant 0 : index
    %4 = vector.load %arg2[%c0_2, %c0_3] : memref<16x32xf32, #tpu.memory_space<vmem>>, vector<16x32xf32>
    %c0_4 = arith.constant 0 : index
    %c0_5 = arith.constant 0 : index
    %5 = vector.load %arg3[%c0_4, %c0_5] : memref<32x128xf32, #tpu.memory_space<vmem>>, vector<32x128xf32>
    %cst = arith.constant dense<0.000000e+00> : vector<16x128xf32>
    %6 = tpu.matmul %4, %5, %cst {dimension_numbers = #tpu.dot_dimension_numbers<[1], [0], [0], [1], [0, 0, 1, 1], [], []>} : vector<16x32xf32>, vector<32x128xf32>, vector<16x128xf32> -> vector<16x128xf32>
    %7 = arith.addf %3, %6 : vector<16x128xf32>
    %c0_6 = arith.constant 0 : index
    %c0_7 = arith.constant 0 : index
    %8 = vector.load %arg8[%c0_6, %c0_7] : memref<16x128xf32, #tpu.memory_space<vmem>>, vector<16x128xf32>
    tpu.vector_store %arg8[%c0_6, %c0_7], %7 {strides = array<i32>} : memref<16x128xf32, #tpu.memory_space<vmem>>, vector<16x128xf32>,
    %c0_i32_8 = arith.constant 0 : i32
    %9 = arith.cmpi eq, %arg1, %c0_i32_8 : i32
    %10 = arith.extui %9 : i1 to i32
    %c0_i32_9 = arith.constant 0 : i32
    %11 = arith.cmpi ne, %10, %c0_i32_9 : i32
    scf.if %11 {
      %c0_10 = arith.constant 0 : index
      %c0_11 = arith.constant 0 : index
      %12 = vector.load %arg8[%c0_10, %c0_11] : memref<16x128xf32, #tpu.memory_space<vmem>>, vector<16x128xf32>
      %c0_12 = arith.constant 0 : index
      %c0_13 = arith.constant 0 : index
      %13 = vector.load %arg4[%c0_12, %c0_13] : memref<1x128xf32, #tpu.memory_space<vmem>>, vector<1x128xf32>
      %14 = vector.broadcast %13 : vector<1x128xf32> to vector<16x128xf32>
      %15 = arith.addf %12, %14 : vector<16x128xf32>
      %cst_14 = arith.constant 0.000000e+00 : f32
      %16 = vector.broadcast %cst_14 : f32 to vector<16x128xf32>
      %17 = arith.maximumf %15, %16 : vector<16x128xf32>
      %c0_15 = arith.constant 0 : index
      %c0_16 = arith.constant 0 : index
      %18 = vector.load %arg5[%c0_15, %c0_16] : memref<128x64xf32, #tpu.memory_space<vmem>>, vector<128x64xf32>
      %cst_17 = arith.constant dense<0.000000e+00> : vector<16x64xf32>
      %19 = tpu.matmul %17, %18, %cst_17 {dimension_numbers = #tpu.dot_dimension_numbers<[1], [0], [0], [1], [0, 0, 1, 1], [], []>} : vector<16x128xf32>, vector<128x64xf32>, vector<16x64xf32> -> vector<16x64xf32>
      %c0_18 = arith.constant 0 : index
      %c0_19 = arith.constant 0 : index
      %20 = vector.load %arg6[%c0_18, %c0_19] : memref<1x64xf32, #tpu.memory_space<vmem>>, vector<1x64xf32>
      %21 = vector.broadcast %20 : vector<1x64xf32> to vector<16x64xf32>
      %22 = arith.addf %19, %21 : vector<16x64xf32>
      %c0_20 = arith.constant 0 : index
      %c0_21 = arith.constant 0 : index
      %23 = vector.load %arg7[%c0_20, %c0_21] : memref<16x64xf32, #tpu.memory_space<vmem>>, vector<16x64xf32>
      tpu.vector_store %arg7[%c0_20, %c0_21], %22 {strides = array<i32>} : memref<16x64xf32, #tpu.memory_space<vmem>>, vector<16x64xf32>,
    } else {
    }
    return
  }
  func.func @transform_0(%arg0: i32, %arg1: i32) -> (i32, i32) {
    %c0_i32 = arith.constant 0 : i32
    return %arg0, %arg1 : i32, i32
  }
  func.func @transform_1(%arg0: i32, %arg1: i32) -> (i32, i32) {
    %c0_i32 = arith.constant 0 : i32
    %c0_i32_0 = arith.constant 0 : i32
    return %arg1, %c0_i32 : i32, i32
  }
  func.func @transform_2(%arg0: i32, %arg1: i32) -> (i32, i32) {
    %c0_i32 = arith.constant 0 : i32
    %c0_i32_0 = arith.constant 0 : i32
    %c0_i32_1 = arith.constant 0 : i32
    return %c0_i32, %c0_i32_0 : i32, i32
  }
  func.func @transform_3(%arg0: i32, %arg1: i32) -> (i32, i32) {
    %c0_i32 = arith.constant 0 : i32
    %c0_i32_0 = arith.constant 0 : i32
    %c0_i32_1 = arith.constant 0 : i32
    return %c0_i32, %c0_i32_0 : i32, i32
  }
  func.func @transform_4(%arg0: i32, %arg1: i32) -> (i32, i32) {
    %c0_i32 = arith.constant 0 : i32
    %c0_i32_0 = arith.constant 0 : i32
    %c0_i32_1 = arith.constant 0 : i32
    return %c0_i32, %c0_i32_0 : i32, i32
  }
  func.func @transform_5(%arg0: i32, %arg1: i32) -> (i32, i32) {
    %c0_i32 = arith.constant 0 : i32
    %c0_i32_0 = arith.constant 0 : i32
    return %arg0, %c0_i32 : i32, i32
  }
}

</mosaic_0001>

<bundles_post_ra>
// kernel: tpu_custom_call.1
= control target key start
LH: loop header
LB: loop body
LE: loop exit
PB: predicated region body
PF: predicated region fallthrough
CT: control target
= control target key end

     0   :  { %vm35_vm0 = vcmask 261120   ;;  %s514_s0 = inlined_call_operand.vmem [shape: f32[16,32], index: 0, kind: input, shape index: {}]   ;;  %s515_s1 = inlined_call_operand.vmem [shape: f32[32,128], index: 1, kind: input, shape index: {}]   ;;  %s516_s2 = inlined_call_operand.vmem [shape: f32[1,128], index: 2, kind: input, shape index: {}]   ;;  %s517_s3 = inlined_call_operand.vmem [shape: f32[128,64], index: 3, kind: input, shape index: {}]   ;;  %s518_s4 = inlined_call_operand.vmem [shape: f32[1,64], index: 4, kind: input, shape index: {}]   ;;  %s519_s5 = inlined_call_operand.hbm [shape: f32[16,64], index: 5, kind: output, shape index: {}]  }
   0x1   :  { %v31_v0 = vld [vmem:[%s515_s1] sm:$0xff]  ;;  %v32_v1 = vld [vmem:[%s515_s1 + $0x8] sm:$0xff]  ;;  %v33_v2 = vld [vmem:[%s515_s1 + $0x10] sm:$0xff] }
   0x2   :  { %v328_v3 = vpack.c.bf16 %v32_v1, %v31_v0  ;;  %v34_v4 = vld [vmem:[%s515_s1 + $0x18] sm:$0xff]  ;;  %v29_v5 = vld [vmem:[%s514_s0] sm:$0xff]  ;;  %v138_v8 = vld [vmem:[%s517_s3 + $0x8] sm:$0xff] }
   0x3   :  { %v332_v6 = vpack.c.bf16 %v34_v4, %v33_v2  ;;  %290 = vmatprep.mubr.msk.f32.mxu0 %vm35_vm0, %v29_v5  ;;  %v137_v7 = vld [vmem:[%s517_s3] sm:$0xff]  ;;  %v139_v9 = vld [vmem:[%s517_s3 + $0x10] sm:$0xff]  ;;  %v140_v11 = vld [vmem:[%s517_s3 + $0x18] sm:$0xff] }
   0x4   :  { %329 = vmatprep.subr.bf16.mxu0 %v328_v3  ;;  %v336_v10 = vpack.c.bf16 %v138_v8, %v137_v7  ;;  %v340_v12 = vpack.c.bf16 %v140_v11, %v139_v9  ;;  %v141_v13 = vld [vmem:[%s517_s3 + $0x20] sm:$0xff]  ;;  %v142_v14 = vld [vmem:[%s517_s3 + $0x28] sm:$0xff] }
   0x5   :  { %331 = vmatpush3.bf16.msra.mxu0 %v328_v3 }
   0x6   :  { %333 = vmatprep.subr.bf16.mxu0 %v332_v6  ;;  %337 = vmatprep.subr.bf16.mxu1 %v336_v10 }
   0x7   :  { %339 = vmatpush3.bf16.msra.mxu1 %v336_v10 }
   0x8   :  { %10 = vsyncpa [#allocation4], 0  ;;  %341 = vmatprep.subr.bf16.mxu1 %v340_v12  ;;  %v344_v15 = vpack.c.bf16 %v142_v14, %v141_v13  ;;  %v30_v16 = vld [vmem:[%s514_s0 + $0x8] sm:$0xff]  ;;  %v143_v17 = vld [vmem:[%s517_s3 + $0x30] sm:$0xff]  ;;  %vm235_vm1 = vcmask 523264  }
   0x9   :  { %335 = vmatpush3.bf16.msra.mxu0 %v332_v6  ;;  %v144_v18 = vld [vmem:[%s517_s3 + $0x38] sm:$0xff]  ;;  %v145_v20 = vld [vmem:[%s517_s3 + $0x40] sm:$0xff]  ;;  %v146_v21 = vld [vmem:[%s517_s3 + $0x48] sm:$0xff] }
   0xa   :  { %v348_v19 = vpack.c.bf16 %v144_v18, %v143_v17  ;;  %v352_v22 = vpack.c.bf16 %v146_v21, %v145_v20  ;;  %v147_v23 = vld [vmem:[%s517_s3 + $0x50] sm:$0xff]  ;;  %v148_v24 = vld [vmem:[%s517_s3 + $0x58] sm:$0xff]  ;;  %v149_v26 = vld [vmem:[%s517_s3 + $0x60] sm:$0xff] }
   0xb   :  { %343 = vmatpush3.bf16.msra.mxu1 %v340_v12  ;;  %v356_v25 = vpack.c.bf16 %v148_v24, %v147_v23  ;;  %v150_v27 = vld [vmem:[%s517_s3 + $0x68] sm:$0xff]  ;;  %v151_v29 = vld [vmem:[%s517_s3 + $0x70] sm:$0xff]  ;;  %v152_v30 = vld [vmem:[%s517_s3 + $0x78] sm:$0xff]  ;;  %s395_s3 = smov [#allocation3]  }
   0xc   :  { %291 = vmatmul.mubr.msk.f32.vlgmr.msra.gmra.mrb[0].mxu0 %vm35_vm0, %v30_v16  ;;  %345 = vmatprep.subr.bf16.mxu1 %v344_v15  ;;  %v360_v28 = vpack.c.bf16 %v150_v27, %v149_v26  ;;  %v364_v31 = vpack.c.bf16 %v152_v30, %v151_v29  ;;  %v256_v32 = vld [vmem:[%s516_s2] ss:$0 sm:$0xff]  ;;  %s243_s13 = sshll.u32 %s395_s3, 4  ;;  %s244_s13 = int_to_ptr.vmem [resolvable:$true] %s243_s13 }
   0xd   :  { %v257_v39 = vld [vmem:[%s518_s4] ss:$0 sm:$0xff]  ;;  %s371_s2 = scalar_lea.vmem %s244_s13, 256  ;;  %p376_p1 = scmp.lt.s32.totalorder %s244_s13, %s244_s13 }
   0xe   :  { %p372_p0 = scmp.ne.s32.totalorder %s244_s13, %s371_s2  ;;  %p377_p2 = scmp.lt.s32.totalorder %s371_s2, %s371_s2 }
   0xf   :  { %347 = vmatpush3.bf16.msra.mxu1 %v344_v15 }
  0x10   :  { %349 = vmatprep.subr.bf16.mxu1 %v348_v19  ;;  %p378_p3 = por %p377_p2, %p376_p1 }
  0x12   :  { %p379_p4 = pnand %p378_p3, %p372_p0 }
  0x13   :  { %351 = vmatpush3.bf16.msra.mxu1 %v348_v19 }
  0x14   :  { %353 = vmatprep.subr.bf16.mxu1 %v352_v22 }
  0x17   :  { %355 = vmatpush3.bf16.msra.mxu1 %v352_v22 }
  0x18   :  { %357 = vmatprep.subr.bf16.mxu1 %v356_v25 }
  0x1b   :  { %359 = vmatpush3.bf16.msra.mxu1 %v356_v25 }
  0x1c   :  { %361 = vmatprep.subr.bf16.mxu1 %v360_v28 }
  0x1f   :  { %363 = vmatpush3.bf16.msra.mxu1 %v360_v28 }
  0x20   :  { %365 = vmatprep.subr.bf16.mxu1 %v364_v31 }
  0x23   :  { %367 = vmatpush3.bf16.msra.mxu1 %v364_v31 }
  0xdf   :  { %v292_v33 = vpop.f32.mrb[0].mxu0 }
  0xe0   :  { %v134_v34 = vadd.f32 %v292_v33, %v256_v32  ;;  %v108_v35 = vpop.f32.mrb[1].mxu0 }
  0xe1   :  { %v133_v36 = vadd.f32 %v256_v32, %v108_v35 }
  0xe2   :  { %v136_v38 = vmax.f32 %v134_v34, 0.0 }
  0xe3   :  { %v135_v37 = vmax.f32 %v133_v36, 0.0 }
  0xe5   :  { %325 = vmatprep.mubr.f32.mxu1 %v135_v37 }
  0xe6   :  { %326 = vmatmul.mubr.f32.vlgmr.msra.gmra.mrb[0].mxu1 %v136_v38 }
 0x1b9   :  { %v327_v40 = vpop.f32.mrb[0].mxu1 }
 0x1ba   :  { %v232_v41 = vadd.f32 %v327_v40, %v257_v39  ;;  %v226_v42 = vpop.f32.mrb[1].mxu1 }
 0x1bb   :  { %v227_v43 = vadd.f32 %v257_v39, %v226_v42 }
 0x1bc   :  { %237 = vst.msk [vmem:[#allocation3 + $0x8] sm:$0xff] %vm235_vm1, %v232_v41 }
 0x1bd   :  { %236 = vst.msk [vmem:[#allocation3] sm:$0xff] %vm235_vm1, %v227_v43 }
 0x1be   :  { %382 = shalt.err (!%p379_p4)
}
 0x1bf   :  { %s383_s4 = scalar_lea.hbm %s519_s5, 256 }
 0x1c0   :  { %p384_p5 = scmp.ne.s32.totalorder %s519_s5, %s383_s4  ;;  %p387_p6 = scmp.lt.u32.totalorder %s383_s4, %s519_s5 }
 0x1c2   :  { %p389_p7 = pnand %p387_p6, %p384_p5 }
 0x1c4   :  { %392 = shalt.err (!%p389_p7)
}
 0x1c5   :  { %s396_s20 = smov 128   ;;  %s397_s21 = smov 8  }
 0x1c6   :  { %249 = dma.vmem_to_hbm [thread:$0]  %s244_s13, 256, %s519_s5, [#allocation4], %s396_s20, %s396_s20, %s397_s21  }
 0x1c7   :  { %393 = dma.done.wait [#allocation4], 256  }
 0x1c8   :  { %394 = vsyncadd [#allocation4], 4294967040 }
 0x1c9   :  { %253 = vsyncpa [#allocation4], 1 }

</bundles_post_ra>
